<compile_context>
chip_gen: v7x
topology: tpu7x:2x2x1
jax: 0.10.0
libtpu: 0.0.40
codegen_flags: <defaults>
</compile_context>

<pallas_src>
import functools

import jax
import jax.numpy as jnp
import numpy as np
from jax.experimental import pallas as pl
from jax.experimental.pallas import tpu as pltpu

_HIGHEST = jax.lax.Precision.HIGHEST  # used only for XLA-side (non-kernel) matmuls


def mha_content_kernel(lens_ref, enc_ref, bias_ref, w_enc_ref, v_bd_ref,
                       ctx_ref, aw_ref,
                       energy_sc, m_sc, l_sc, acc_sc,
                       *, t_orig, t_tile, sigmoid_smoothing):
    """Grid = (batch, head_group, T_tile).

    lens_ref:   (B,) int32 in SMEM (scalar prefetch)
    enc_ref:    (1, tT, E)                 one T tile of one batch element
    bias_ref:   (1, 1, 1, HAg)             dec_out @ w_dec + b_enc (fused, per batch/group)
    w_enc_ref:  (1, E, HAg)                fused per-group content projection
    v_bd_ref:   (1, HAg, Hg_pad)           block-diagonal v, sharpening folded in
    ctx_ref:    (1, 1, Hg_pad, E)          per-head context (written on last T tile)
    aw_ref:     (1, 1, Hg_pad, T_pad)      attention weights, lane-dense (T on lanes)
    energy_sc:  (nT, Hg_pad, tT)  VMEM     full masked energy (tiny: 8 sublanes x T)
    m_sc/l_sc:  (Hg_pad, 1)       VMEM     online-softmax running max / denom
    acc_sc:     (Hg_pad, E)       VMEM     running (unnormalized) context accumulator
    """
    b = pl.program_id(0)
    t = pl.program_id(2)
    n_t = pl.num_programs(2)
    length = lens_ref[b]

    @pl.when(t == 0)
    def _init():
        m_sc[...] = jnp.full_like(m_sc, -jnp.inf)
        l_sc[...] = jnp.zeros_like(l_sc)
        acc_sc[...] = jnp.zeros_like(acc_sc)

    enc = enc_ref[0]                                              # [tT, E]

    # Fused all-head content projection + tanh (one wide MXU matmul per tile).
    enc_a = jnp.dot(enc, w_enc_ref[0],
                    preferred_element_type=jnp.float32)           # [tT, HAg] f32
    act = jnp.tanh(enc_a + bias_ref[0, 0].astype(jnp.float32))    # [tT, HAg]

    # All-head energy via block-diagonal v (sharpening already folded in).
    energy_th = jnp.dot(act.astype(v_bd_ref.dtype), v_bd_ref[0],
                        preferred_element_type=jnp.float32)       # [tT, Hg_pad]
    energy = energy_th.T                                          # [Hg_pad, tT] lane-dense

    # Masking (PyTorch semantics): energy *= (1 | -1024), padded T tail excluded.
    t_ids = t * t_tile + jax.lax.broadcasted_iota(jnp.int32, energy.shape, 1)
    padded = jnp.where(t_ids < t_orig, energy * jnp.float32(-1024.0),
                       jnp.float32(-1e30))
    energy = jnp.where(t_ids < length, energy, padded)

    energy_sc[t] = energy                                         # keep for final aw

    if sigmoid_smoothing:
        p = jax.nn.sigmoid(energy)                                # [Hg_pad, tT]
        acc_sc[...] += jnp.dot(p.astype(enc.dtype), enc,
                               preferred_element_type=jnp.float32)
    else:
        # Online softmax across T tiles.
        m_prev = m_sc[...]
        m_new = jnp.maximum(m_prev, jnp.max(energy, axis=-1, keepdims=True))
        alpha = jnp.exp(m_prev - m_new)
        p = jnp.exp(energy - m_new)
        l_sc[...] = alpha * l_sc[...] + jnp.sum(p, axis=-1, keepdims=True)
        acc_sc[...] = alpha * acc_sc[...] + jnp.dot(p.astype(enc.dtype), enc,
                                                    preferred_element_type=jnp.float32)
        m_sc[...] = m_new

    @pl.when(t == n_t - 1)
    def _finalize():
        n_tiles = energy_sc.shape[0]                              # static
        if sigmoid_smoothing:
            ctx_ref[0, 0] = acc_sc[...].astype(ctx_ref.dtype)
            for j in range(n_tiles):                              # static unrolled loop
                aw_ref[0, 0, :, j * t_tile:(j + 1) * t_tile] = (
                    jax.nn.sigmoid(energy_sc[j]).astype(aw_ref.dtype))
        else:
            inv_l = 1.0 / l_sc[...]            # exact; approx recip bought nothing here
            ctx_ref[0, 0] = (acc_sc[...] * inv_l).astype(ctx_ref.dtype)
            m_fin = m_sc[...]
            for j in range(n_tiles):
                aw_ref[0, 0, :, j * t_tile:(j + 1) * t_tile] = (
                    (jnp.exp(energy_sc[j] - m_fin) * inv_l).astype(aw_ref.dtype))


def multihead_attention_forward(enc_out, x_lens, dec_out, aw_step, params, *,
                                num_heads, sharpening_factor=1.0,
                                sigmoid_smoothing=False,
                                compute_dtype=jnp.float32,   # bf16 on v6e/v7x for MXU speed
                                aw_dtype=None,               # e.g. jnp.bfloat16 to halve aw writeback
                                t_tile=512,
                                num_head_groups=1):          # >1 gives v7x's 2nd TC work at B=1
    """Pallas wrapper mirroring MultiheadAttentionMechanism.forward (content)."""
    del aw_step  # unused for the 'content' attention type
    B, T, E = enc_out.shape
    _, _, D = dec_out.shape
    H = num_heads
    A = params["w_enc"].shape[-1]
    G = int(num_head_groups)
    assert H % G == 0, "num_heads must be divisible by num_head_groups"
    Hg = H // G
    HA = H * A
    HAg = Hg * A
    Hg_pad = max(8, ((Hg + 7) // 8) * 8)

    # Lane-dense T: tile width is a multiple of 128; T padded up to a tile multiple.
    tt = min(int(t_tile), T)
    tt = max(128, ((tt + 127) // 128) * 128)
    T_pad = ((T + tt - 1) // tt) * tt
    n_t = T_pad // tt

    if aw_dtype is None:
        aw_dtype = enc_out.dtype

    lens = jnp.asarray(x_lens, dtype=jnp.int32)                      # (B,) -> SMEM

    enc_pad = enc_out if T_pad == T else jnp.pad(
        enc_out, ((0, 0), (0, T_pad - T), (0, 0)))
    enc_pad = enc_pad.astype(compute_dtype)

    # ---- fuse per-head weights once per call in XLA ----
    # w_enc: (H, E, A) -> (G, E, Hg*A) head-major within each group.
    w_enc_all = jnp.transpose(params["w_enc"], (1, 0, 2)).reshape(E, G, HAg)
    w_enc_all = jnp.transpose(w_enc_all, (1, 0, 2)).astype(compute_dtype)    # (G, E, HAg)
    w_dec_all = jnp.transpose(params["w_dec"], (1, 0, 2)).reshape(D, HA)
    b_enc_all = params["b_enc"].reshape(1, HA)
    # dec projection + b_enc folded into ONE per-batch bias (hoisted M=1 matmul).
    bias_all = jnp.einsum("bod,da->boa", dec_out, w_dec_all,
                          precision=_HIGHEST) + b_enc_all                    # (B, 1, HA)
    bias_all = bias_all.reshape(B, 1, G, HAg).transpose(0, 2, 1, 3)          # (B, G, 1, HAg)
    bias_all = bias_all.astype(jnp.float32)
    # Block-diagonal v per group with sharpening folded in, padded to Hg_pad cols.
    v_flat = params["v"][:, :, 0] * jnp.asarray(sharpening_factor,
                                                params["v"].dtype)           # (H, A)
    v_grp = v_flat.reshape(G, Hg, A)
    eye = jnp.eye(Hg, dtype=v_flat.dtype)
    v_bd = (v_grp[:, :, :, None] * eye[None, :, None, :]).reshape(G, HAg, Hg)
    v_bd = jnp.pad(v_bd, ((0, 0), (0, 0), (0, Hg_pad - Hg))).astype(compute_dtype)

    kernel = functools.partial(
        mha_content_kernel,
        t_orig=T,
        t_tile=tt,
        sigmoid_smoothing=bool(sigmoid_smoothing),
    )

    grid_spec = pltpu.PrefetchScalarGridSpec(
        num_scalar_prefetch=1,                        # x_lens -> SMEM
        grid=(B, G, n_t),
        in_specs=[
            pl.BlockSpec((1, tt, E), lambda b, g, t, lens: (b, t, 0)),          # enc tile
            pl.BlockSpec((1, 1, 1, HAg), lambda b, g, t, lens: (b, g, 0, 0)),   # fused bias
            pl.BlockSpec((1, E, HAg), lambda b, g, t, lens: (g, 0, 0)),         # w_enc (group)
            pl.BlockSpec((1, HAg, Hg_pad), lambda b, g, t, lens: (g, 0, 0)),    # v blockdiag
        ],
        out_specs=[
            pl.BlockSpec((1, 1, Hg_pad, E), lambda b, g, t, lens: (b, g, 0, 0)),      # ctx
            pl.BlockSpec((1, 1, Hg_pad, T_pad), lambda b, g, t, lens: (b, g, 0, 0)),  # aw
        ],
        scratch_shapes=[
            pltpu.VMEM((n_t, Hg_pad, tt), jnp.float32),   # full masked energy
            pltpu.VMEM((Hg_pad, 1), jnp.float32),         # running max
            pltpu.VMEM((Hg_pad, 1), jnp.float32),         # running denom
            pltpu.VMEM((Hg_pad, E), jnp.float32),         # ctx accumulator
        ],
    )

    ctx_heads, aw_out = pl.pallas_call(
        kernel,
        out_shape=(
            jax.ShapeDtypeStruct((B, G, Hg_pad, E), jnp.float32),
            jax.ShapeDtypeStruct((B, G, Hg_pad, T_pad), aw_dtype),
        ),
        grid_spec=grid_spec,
        compiler_params=pltpu.CompilerParams(
            dimension_semantics=("parallel", "parallel", "arbitrary")),
    )(lens, enc_pad, bias_all, w_enc_all, v_bd)

    # Final multi-head projection hoisted out of the kernel (one [B, H*E] x [H*E, E] matmul).
    ctx_flat = ctx_heads[:, :, :Hg, :].reshape(B, H * E)    # head-major == torch.cat order
    context_vec = (jnp.dot(ctx_flat, params["w_mha"], precision=_HIGHEST)
                   + params["b_mha"]).reshape(B, 1, E)
    aw = aw_out[:, :, :Hg, :T].astype(jnp.float32).reshape(B, H, T)
    aw = jnp.transpose(aw, (0, 2, 1))                       # (B, T, H)
    return context_vec, aw


def reference_forward(enc_out, x_lens, dec_out, params, *, num_heads,
                      sharpening_factor=1.0, sigmoid_smoothing=False):
    """Pure-JAX reference mirroring the PyTorch forward (content attention)."""
    B, T, E = enc_out.shape
    t_idx = jnp.arange(T)[None, :]
    lens = jnp.asarray(x_lens, dtype=jnp.int32)[:, None]
    mask = jnp.where(t_idx < lens, 1.0, -1024.0).astype(enc_out.dtype)   # [B, T]

    aw_heads, ctx_heads = [], []
    for h in range(num_heads):
        enc_a = jnp.einsum("bte,ea->bta", enc_out, params["w_enc"][h],
                           precision=_HIGHEST) + params["b_enc"][h]
        dec_a = jnp.einsum("bod,da->boa", dec_out, params["w_dec"][h],
                           precision=_HIGHEST)                           # [B,1,A]
        energy = jnp.einsum("bta,ao->bt", jnp.tanh(enc_a + dec_a), params["v"][h],
                            precision=_HIGHEST)
        energy = energy * mask * sharpening_factor
        if sigmoid_smoothing:
            aw = jax.nn.sigmoid(energy)
        else:
            aw = jax.nn.softmax(energy, axis=-1)
        aw_heads.append(aw)
        ctx_heads.append(jnp.sum(enc_out * aw[..., None], axis=1, keepdims=True))
    ctx = jnp.concatenate(ctx_heads, axis=-1)                            # [B,1,E*H]
    ctx = jnp.einsum("bof,fe->boe", ctx, params["w_mha"],
                     precision=_HIGHEST) + params["b_mha"][0]
    aw = jnp.stack(aw_heads, axis=-1)                                    # [B,T,H]
    return ctx, aw


def _make_params(key, H, E, D, A):
    ks = jax.random.split(key, 6)
    return {
        "w_enc": 0.1 * jax.random.normal(ks[0], (H, E, A), dtype=jnp.float32),
        "b_enc": 0.1 * jax.random.normal(ks[1], (H, 1, A), dtype=jnp.float32),
        "w_dec": 0.1 * jax.random.normal(ks[2], (H, D, A), dtype=jnp.float32),
        "v":     0.1 * jax.random.normal(ks[3], (H, A, 1), dtype=jnp.float32),
        "w_mha": 0.1 * jax.random.normal(ks[4], (E * H, E), dtype=jnp.float32),
        "b_mha": 0.1 * jax.random.normal(ks[5], (1, E), dtype=jnp.float32),
    }


def _run_case(*, B, T, E, D, A, H, x_lens, sharpen, sigmoid, groups, t_tile, key):
    k_enc, k_dec, k_par = jax.random.split(key, 3)
    enc_out = jax.random.normal(k_enc, (B, T, E), dtype=jnp.float32)
    dec_out = jax.random.normal(k_dec, (B, 1, D), dtype=jnp.float32)
    params = _make_params(k_par, H, E, D, A)

    ctx, aw = multihead_attention_forward(
        enc_out, x_lens, dec_out, None, params,
        num_heads=H, sharpening_factor=sharpen, sigmoid_smoothing=sigmoid,
        t_tile=t_tile, num_head_groups=groups)
    jax.block_until_ready((ctx, aw))

    ctx_ref, aw_ref = reference_forward(
        enc_out, x_lens, dec_out, params,
        num_heads=H, sharpening_factor=sharpen, sigmoid_smoothing=sigmoid)

    assert ctx.shape == (B, 1, E) and aw.shape == (B, T, H)
    np.testing.assert_allclose(np.asarray(ctx), np.asarray(ctx_ref),
                               rtol=1e-2, atol=2e-3)
    np.testing.assert_allclose(np.asarray(aw), np.asarray(aw_ref),
                               rtol=1e-2, atol=2e-3)


if __name__ == "__main__":
    root = jax.random.PRNGKey(0)
    k1, k2, k3 = jax.random.split(root, 3)

    # 1) Small shapes implied by the module's forward (B=2, T=8): single T tile,
    #    softmax, length-padded second sequence.
    _run_case(B=2, T=8, E=32, D=32, A=16, H=2,
              x_lens=[8, 5], sharpen=1.5, sigmoid=False, groups=1, t_tile=512, key=k1)

    # 2) Longer T: multi-tile online softmax + 2 head groups (v7x second-TC path),
    #    with length padding landing in a non-first T tile.
    _run_case(B=2, T=300, E=64, D=32, A=16, H=4,
              x_lens=[300, 299], sharpen=2.0, sigmoid=False, groups=2, t_tile=128, key=k2)

    # 3) Sigmoid-smoothing branch accumulated across multiple T tiles.
    _run_case(B=2, T=300, E=64, D=32, A=16, H=2,
              x_lens=[300, 300], sharpen=1.0, sigmoid=True, groups=1, t_tile=128, key=k3)

    print("KERNEL_OK")
</pallas_src>

<mosaic_0001>
module attributes {stable_mosaic.version = 11 : i64} {
  func.func @mha_content_kernel(%arg0: i32, %arg1: i32, %arg2: i32, %arg3: memref<2xi32, #tpu.memory_space<smem>>, %arg4: memref<1x128x32xf32, #tpu.memory_space<vmem>>, %arg5: memref<1x1x1x32xf32, #tpu.memory_space<vmem>>, %arg6: memref<1x32x32xf32, #tpu.memory_space<vmem>>, %arg7: memref<1x32x8xf32, #tpu.memory_space<vmem>>, %arg8: memref<1x1x8x32xf32, #tpu.memory_space<vmem>>, %arg9: memref<1x1x8x128xf32, #tpu.memory_space<vmem>>, %arg10: memref<1x8x128xf32, #tpu.memory_space<vmem>>, %arg11: memref<8x1xf32, #tpu.memory_space<vmem>>, %arg12: memref<8x1xf32, #tpu.memory_space<vmem>>, %arg13: memref<8x32xf32, #tpu.memory_space<vmem>>) attributes {dimension_semantics = [#tpu.dimension_semantics<parallel>, #tpu.dimension_semantics<parallel>, #tpu.dimension_semantics<arbitrary>], iteration_bounds = array<i64: 2, 1, 1>, scalar_prefetch = 1 : i64, scratch_operands = 4 : i64, tpu.core_type = #tpu.core_type<tc>, window_params = [{transform_indices = @transform_0, window_bounds = array<i64: 1, 128, 32>}, {transform_indices = @transform_1, window_bounds = array<i64: 1, 1, 1, 32>}, {transform_indices = @transform_2, window_bounds = array<i64: 1, 32, 32>}, {transform_indices = @transform_3, window_bounds = array<i64: 1, 32, 8>}, {transform_indices = @transform_4, window_bounds = array<i64: 1, 1, 8, 32>}, {transform_indices = @transform_5, window_bounds = array<i64: 1, 1, 8, 128>}]} {
    %0 = arith.index_cast %arg0 : i32 to index
    %1 = memref.load %arg3[%0] : memref<2xi32, #tpu.memory_space<smem>>
    %c0_i32 = arith.constant 0 : i32
    %2 = arith.cmpi eq, %arg2, %c0_i32 : i32
    %3 = arith.extui %2 : i1 to i32
    %c0_i32_0 = arith.constant 0 : i32
    %4 = arith.cmpi ne, %3, %c0_i32_0 : i32
    scf.if %4 {
      %cst_35 = arith.constant 0xFF800000 : f32
      %61 = vector.broadcast %cst_35 : f32 to vector<8x1xf32>
      %c0_36 = arith.constant 0 : index
      %c0_37 = arith.constant 0 : index
      %62 = vector.load %arg11[%c0_36, %c0_37] : memref<8x1xf32, #tpu.memory_space<vmem>>, vector<8x1xf32>
      tpu.vector_store %arg11[%c0_36, %c0_37], %61 {strides = array<i32>} : memref<8x1xf32, #tpu.memory_space<vmem>>, vector<8x1xf32>,
      %cst_38 = arith.constant 0.000000e+00 : f32
      %63 = vector.broadcast %cst_38 : f32 to vector<8x1xf32>
      %c0_39 = arith.constant 0 : index
      %c0_40 = arith.constant 0 : index
      %64 = vector.load %arg12[%c0_39, %c0_40] : memref<8x1xf32, #tpu.memory_space<vmem>>, vector<8x1xf32>
      tpu.vector_store %arg12[%c0_39, %c0_40], %63 {strides = array<i32>} : memref<8x1xf32, #tpu.memory_space<vmem>>, vector<8x1xf32>,
      %cst_41 = arith.constant 0.000000e+00 : f32
      %65 = vector.broadcast %cst_41 : f32 to vector<8x32xf32>
      %c0_42 = arith.constant 0 : index
      %c0_43 = arith.constant 0 : index
      %66 = vector.load %arg13[%c0_42, %c0_43] : memref<8x32xf32, #tpu.memory_space<vmem>>, vector<8x32xf32>
      tpu.vector_store %arg13[%c0_42, %c0_43], %65 {strides = array<i32>} : memref<8x32xf32, #tpu.memory_space<vmem>>, vector<8x32xf32>,
    } else {
    }
    %c0 = arith.constant 0 : index
    %c0_1 = arith.constant 0 : index
    %c0_2 = arith.constant 0 : index
    %5 = vector.load %arg4[%c0, %c0_1, %c0_2] : memref<1x128x32xf32, #tpu.memory_space<vmem>>, vector<1x128x32xf32>
    %6 = vector.shape_cast %5 : vector<1x128x32xf32> to vector<128x32xf32>
    %c0_3 = arith.constant 0 : index
    %c0_4 = arith.constant 0 : index
    %c0_5 = arith.constant 0 : index
    %7 = vector.load %arg6[%c0_3, %c0_4, %c0_5] : memref<1x32x32xf32, #tpu.memory_space<vmem>>, vector<1x32x32xf32>
    %8 = vector.shape_cast %7 : vector<1x32x32xf32> to vector<32x32xf32>
    %cst = arith.constant dense<0.000000e+00> : vector<128x32xf32>
    %9 = tpu.matmul %6, %8, %cst {dimension_numbers = #tpu.dot_dimension_numbers<[1], [0], [0], [1], [0, 0, 1, 1], [], []>} : vector<128x32xf32>, vector<32x32xf32>, vector<128x32xf32> -> vector<128x32xf32>
    %c0_6 = arith.constant 0 : index
    %c0_7 = arith.constant 0 : index
    %c0_8 = arith.constant 0 : index
    %c0_9 = arith.constant 0 : index
    %10 = vector.load %arg5[%c0_6, %c0_7, %c0_8, %c0_9] : memref<1x1x1x32xf32, #tpu.memory_space<vmem>>, vector<1x1x1x32xf32>
    %11 = vector.shape_cast %10 : vector<1x1x1x32xf32> to vector<1x32xf32>
    %12 = vector.broadcast %11 : vector<1x32xf32> to vector<128x32xf32>
    %13 = arith.addf %9, %12 : vector<128x32xf32>
    %14 = math.tanh %13 : vector<128x32xf32>
    %c0_10 = arith.constant 0 : index
    %c0_11 = arith.constant 0 : index
    %c0_12 = arith.constant 0 : index
    %15 = vector.load %arg7[%c0_10, %c0_11, %c0_12] : memref<1x32x8xf32, #tpu.memory_space<vmem>>, vector<1x32x8xf32>
    %16 = vector.shape_cast %15 : vector<1x32x8xf32> to vector<32x8xf32>
    %cst_13 = arith.constant dense<0.000000e+00> : vector<128x8xf32>
    %17 = tpu.matmul %14, %16, %cst_13 {dimension_numbers = #tpu.dot_dimension_numbers<[1], [0], [0], [1], [0, 0, 1, 1], [], []>} : vector<128x32xf32>, vector<32x8xf32>, vector<128x8xf32> -> vector<128x8xf32>
    %18 = tpu.transpose %17, [1, 0] : vector<128x8xf32> -> vector<8x128xf32>
    %c128_i32 = arith.constant 128 : i32
    %19 = arith.muli %arg2, %c128_i32 : i32
    %20 = tpu.iota {dimensions = array<i32: 1>} : vector<8x128xi32>
    %21 = vector.broadcast %19 : i32 to vector<8x128xi32>
    %22 = arith.addi %21, %20 : vector<8x128xi32>
    %c8_i32 = arith.constant 8 : i32
    %23 = vector.broadcast %c8_i32 : i32 to vector<8x128xi32>
    %24 = arith.cmpi slt, %22, %23 : vector<8x128xi32>
    %cst_14 = arith.constant -1.024000e+03 : f32
    %25 = vector.broadcast %cst_14 : f32 to vector<8x128xf32>
    %26 = arith.mulf %18, %25 : vector<8x128xf32>
    %cst_15 = arith.constant -1.000000e+30 : f32
    %27 = vector.broadcast %cst_15 : f32 to vector<8x128xf32>
    %28 = arith.select %24, %26, %27 : vector<8x128xi1>, vector<8x128xf32>
    %29 = vector.broadcast %1 : i32 to vector<8x128xi32>
    %30 = arith.cmpi slt, %22, %29 : vector<8x128xi32>
    %31 = arith.select %30, %18, %28 : vector<8x128xi1>, vector<8x128xf32>
    %32 = arith.index_cast %arg2 : i32 to index
    %c0_16 = arith.constant 0 : index
    %c0_17 = arith.constant 0 : index
    %33 = vector.load %arg10[%32, %c0_16, %c0_17] : memref<1x8x128xf32, #tpu.memory_space<vmem>>, vector<1x8x128xf32>
    %34 = vector.shape_cast %33 : vector<1x8x128xf32> to vector<8x128xf32>
    %35 = vector.shape_cast %31 : vector<8x128xf32> to vector<1x8x128xf32>
    tpu.vector_store %arg10[%32, %c0_16, %c0_17], %35 {strides = array<i32>} : memref<1x8x128xf32, #tpu.memory_space<vmem>>, vector<1x8x128xf32>,
    %c0_18 = arith.constant 0 : index
    %c0_19 = arith.constant 0 : index
    %36 = vector.load %arg11[%c0_18, %c0_19] : memref<8x1xf32, #tpu.memory_space<vmem>>, vector<8x1xf32>
    %cst_20 = arith.constant dense<0xFF800000> : vector<8xf32>
    %37 = vector.multi_reduction <maximumf>, %31, %cst_20 [1] : vector<8x128xf32> to vector<8xf32>
    %38 = vector.shape_cast %37 : vector<8xf32> to vector<8x1xf32>
    %39 = arith.maximumf %36, %38 : vector<8x1xf32>
    %40 = arith.subf %36, %39 : vector<8x1xf32>
    %41 = math.exp %40 : vector<8x1xf32>
    %42 = vector.broadcast %39 : vector<8x1xf32> to vector<8x128xf32>
    %43 = arith.subf %31, %42 : vector<8x128xf32>
    %44 = math.exp %43 : vector<8x128xf32>
    %c0_21 = arith.constant 0 : index
    %c0_22 = arith.constant 0 : index
    %45 = vector.load %arg12[%c0_21, %c0_22] : memref<8x1xf32, #tpu.memory_space<vmem>>, vector<8x1xf32>
    %46 = arith.mulf %41, %45 : vector<8x1xf32>
    %cst_23 = arith.constant dense<0.000000e+00> : vector<8xf32>
    %47 = vector.multi_reduction <add>, %44, %cst_23 [1] : vector<8x128xf32> to vector<8xf32>
    %48 = vector.shape_cast %47 : vector<8xf32> to vector<8x1xf32>
    %49 = arith.addf %46, %48 : vector<8x1xf32>
    %c0_24 = arith.constant 0 : index
    %c0_25 = arith.constant 0 : index
    %50 = vector.load %arg12[%c0_24, %c0_25] : memref<8x1xf32, #tpu.memory_space<vmem>>, vector<8x1xf32>
    tpu.vector_store %arg12[%c0_24, %c0_25], %49 {strides = array<i32>} : memref<8x1xf32, #tpu.memory_space<vmem>>, vector<8x1xf32>,
    %c0_26 = arith.constant 0 : index
    %c0_27 = arith.constant 0 : index
    %51 = vector.load %arg13[%c0_26, %c0_27] : memref<8x32xf32, #tpu.memory_space<vmem>>, vector<8x32xf32>
    %52 = vector.broadcast %41 : vector<8x1xf32> to vector<8x32xf32>
    %53 = arith.mulf %52, %51 : vector<8x32xf32>
    %cst_28 = arith.constant dense<0.000000e+00> : vector<8x32xf32>
    %54 = tpu.matmul %44, %6, %cst_28 {dimension_numbers = #tpu.dot_dimension_numbers<[1], [0], [0], [1], [0, 0, 1, 1], [], []>} : vector<8x128xf32>, vector<128x32xf32>, vector<8x32xf32> -> vector<8x32xf32>
    %55 = arith.addf %53, %54 : vector<8x32xf32>
    %c0_29 = arith.constant 0 : index
    %c0_30 = arith.constant 0 : index
    %56 = vector.load %arg13[%c0_29, %c0_30] : memref<8x32xf32, #tpu.memory_space<vmem>>, vector<8x32xf32>
    tpu.vector_store %arg13[%c0_29, %c0_30], %55 {strides = array<i32>} : memref<8x32xf32, #tpu.memory_space<vmem>>, vector<8x32xf32>,
    %c0_31 = arith.constant 0 : index
    %c0_32 = arith.constant 0 : index
    %57 = vector.load %arg11[%c0_31, %c0_32] : memref<8x1xf32, #tpu.memory_space<vmem>>, vector<8x1xf32>
    tpu.vector_store %arg11[%c0_31, %c0_32], %39 {strides = array<i32>} : memref<8x1xf32, #tpu.memory_space<vmem>>, vector<8x1xf32>,
    %c0_i32_33 = arith.constant 0 : i32
    %58 = arith.cmpi eq, %arg2, %c0_i32_33 : i32
    %59 = arith.extui %58 : i1 to i32
    %c0_i32_34 = arith.constant 0 : i32
    %60 = arith.cmpi ne, %59, %c0_i32_34 : i32
    scf.if %60 {
      %c0_35 = arith.constant 0 : index
      %c0_36 = arith.constant 0 : index
      %61 = vector.load %arg12[%c0_35, %c0_36] : memref<8x1xf32, #tpu.memory_space<vmem>>, vector<8x1xf32>
      %cst_37 = arith.constant 1.000000e+00 : f32
      %62 = vector.broadcast %cst_37 : f32 to vector<8x1xf32>
      %63 = arith.divf %62, %61 : vector<8x1xf32>
      %c0_38 = arith.constant 0 : index
      %c0_39 = arith.constant 0 : index
      %64 = vector.load %arg13[%c0_38, %c0_39] : memref<8x32xf32, #tpu.memory_space<vmem>>, vector<8x32xf32>
      %65 = vector.broadcast %63 : vector<8x1xf32> to vector<8x32xf32>
      %66 = arith.mulf %64, %65 : vector<8x32xf32>
      %c0_40 = arith.constant 0 : index
      %c0_41 = arith.constant 0 : index
      %c0_42 = arith.constant 0 : index
      %c0_43 = arith.constant 0 : index
      %67 = vector.load %arg8[%c0_40, %c0_41, %c0_42, %c0_43] : memref<1x1x8x32xf32, #tpu.memory_space<vmem>>, vector<1x1x8x32xf32>
      %68 = vector.shape_cast %67 : vector<1x1x8x32xf32> to vector<8x32xf32>
      %69 = vector.shape_cast %66 : vector<8x32xf32> to vector<1x1x8x32xf32>
      tpu.vector_store %arg8[%c0_40, %c0_41, %c0_42, %c0_43], %69 {strides = array<i32>} : memref<1x1x8x32xf32, #tpu.memory_space<vmem>>, vector<1x1x8x32xf32>,
      %c0_44 = arith.constant 0 : index
      %c0_45 = arith.constant 0 : index
      %70 = vector.load %arg11[%c0_44, %c0_45] : memref<8x1xf32, #tpu.memory_space<vmem>>, vector<8x1xf32>
      %c0_46 = arith.constant 0 : index
      %c0_47 = arith.constant 0 : index
      %c0_48 = arith.constant 0 : index
      %71 = vector.load %arg10[%c0_46, %c0_47, %c0_48] : memref<1x8x128xf32, #tpu.memory_space<vmem>>, vector<1x8x128xf32>
      %72 = vector.shape_cast %71 : vector<1x8x128xf32> to vector<8x128xf32>
      %73 = vector.broadcast %70 : vector<8x1xf32> to vector<8x128xf32>
      %74 = arith.subf %72, %73 : vector<8x128xf32>
      %75 = math.exp %74 : vector<8x128xf32>
      %76 = vector.broadcast %63 : vector<8x1xf32> to vector<8x128xf32>
      %77 = arith.mulf %75, %76 : vector<8x128xf32>
      %c0_49 = arith.constant 0 : index
      %c0_50 = arith.constant 0 : index
      %c0_51 = arith.constant 0 : index
      %c0_52 = arith.constant 0 : index
      %78 = vector.load %arg9[%c0_49, %c0_50, %c0_51, %c0_52] : memref<1x1x8x128xf32, #tpu.memory_space<vmem>>, vector<1x1x8x128xf32>
      %79 = vector.shape_cast %78 : vector<1x1x8x128xf32> to vector<8x128xf32>
      %80 = vector.shape_cast %77 : vector<8x128xf32> to vector<1x1x8x128xf32>
      tpu.vector_store %arg9[%c0_49, %c0_50, %c0_51, %c0_52], %80 {strides = array<i32>} : memref<1x1x8x128xf32, #tpu.memory_space<vmem>>, vector<1x1x8x128xf32>,
    } else {
    }
    return
  }
  func.func @transform_0(%arg0: i32, %arg1: i32, %arg2: i32, %arg3: memref<2xi32, #tpu.memory_space<smem>>) -> (i32, i32, i32) {
    %c0_i32 = arith.constant 0 : i32
    %c0_i32_0 = arith.constant 0 : i32
    return %arg0, %arg2, %c0_i32 : i32, i32, i32
  }
  func.func @transform_1(%arg0: i32, %arg1: i32, %arg2: i32, %arg3: memref<2xi32, #tpu.memory_space<smem>>) -> (i32, i32, i32, i32) {
    %c0_i32 = arith.constant 0 : i32
    %c0_i32_0 = arith.constant 0 : i32
    %c0_i32_1 = arith.constant 0 : i32
    return %arg0, %arg1, %c0_i32, %c0_i32_0 : i32, i32, i32, i32
  }
  func.func @transform_2(%arg0: i32, %arg1: i32, %arg2: i32, %arg3: memref<2xi32, #tpu.memory_space<smem>>) -> (i32, i32, i32) {
    %c0_i32 = arith.constant 0 : i32
    %c0_i32_0 = arith.constant 0 : i32
    %c0_i32_1 = arith.constant 0 : i32
    return %arg1, %c0_i32, %c0_i32_0 : i32, i32, i32
  }
  func.func @transform_3(%arg0: i32, %arg1: i32, %arg2: i32, %arg3: memref<2xi32, #tpu.memory_space<smem>>) -> (i32, i32, i32) {
    %c0_i32 = arith.constant 0 : i32
    %c0_i32_0 = arith.constant 0 : i32
    %c0_i32_1 = arith.constant 0 : i32
    return %arg1, %c0_i32, %c0_i32_0 : i32, i32, i32
  }
  func.func @transform_4(%arg0: i32, %arg1: i32, %arg2: i32, %arg3: memref<2xi32, #tpu.memory_space<smem>>) -> (i32, i32, i32, i32) {
    %c0_i32 = arith.constant 0 : i32
    %c0_i32_0 = arith.constant 0 : i32
    %c0_i32_1 = arith.constant 0 : i32
    return %arg0, %arg1, %c0_i32, %c0_i32_0 : i32, i32, i32, i32
  }
  func.func @transform_5(%arg0: i32, %arg1: i32, %arg2: i32, %arg3: memref<2xi32, #tpu.memory_space<smem>>) -> (i32, i32, i32, i32) {
    %c0_i32 = arith.constant 0 : i32
    %c0_i32_0 = arith.constant 0 : i32
    %c0_i32_1 = arith.constant 0 : i32
    return %arg0, %arg1, %c0_i32, %c0_i32_0 : i32, i32, i32, i32
  }
}

</mosaic_0001>

<bundles_post_ra>
// kernel: tpu_custom_call.1
= control target key start
LH: loop header
LB: loop body
LE: loop exit
PB: predicated region body
PF: predicated region fallthrough
CT: control target
= control target key end

     0   :  { %s2005_s0 = inlined_call_operand.vmem [shape: s32[2], index: 0, kind: input, shape index: {}]   ;;  %s2006_s1 = inlined_call_operand.vmem [shape: f32[2,128,32], index: 1, kind: input, shape index: {}]   ;;  %s2007_s2 = inlined_call_operand.vmem [shape: f32[2,1,1,32], index: 2, kind: input, shape index: {}]   ;;  %s2008_s3 = inlined_call_operand.vmem [shape: f32[1,32,32], index: 3, kind: input, shape index: {}]   ;;  %s2009_s4 = inlined_call_operand.vmem [shape: f32[1,32,8], index: 4, kind: input, shape index: {}]   ;;  %s2010_s5 = inlined_call_operand.hbm [shape: f32[2,1,8,32], index: 5, kind: output, shape index: {0}]   ;;  %s2011_s6 = inlined_call_operand.hbm [shape: f32[2,1,8,128], index: 6, kind: output, shape index: {1}]  }
   0x1   :  { %s12_s23 = sshll.u32 %s2005_s0, 4  ;;  %s13_s23 = int_to_ptr.vmem [resolvable:$true] %s12_s23 }
   0x2   :  { %s1506_s24 = scalar_lea.vmem %s13_s23, 16  ;;  %p1511_p1 = scmp.lt.s32.totalorder %s13_s23, %s13_s23 }
   0x3   :  { %p1507_p0 = scmp.ne.s32.totalorder %s13_s23, %s1506_s24  ;;  %p1512_p2 = scmp.lt.s32.totalorder %s1506_s24, %s1506_s24 }
   0x5   :  { %p1513_p3 = por %p1512_p2, %p1511_p1 }
   0x7   :  { %p1514_p4 = pnand %p1513_p3, %p1507_p0 }
   0x9   :  { %1517 = shalt.err (!%p1514_p4)  }
   0xa   :  { %s1632_s25 = smov [#allocation7]  }
   0xb   :  { %15 = dma.vmem_to_smem %s13_s23, 16, %s1632_s25, [#allocation6] }
   0xc   :  { %1598 = dma.done.wait [#allocation6], 16 }
   0xd   :  { %1599 = vsyncadd [#allocation6], 4294967280 }
   0xe   :  { %17 = sfence }
   0xf   :  { %18 = vsyncpa [#allocation9], 0 }
  0x10   :  { %20 = vsyncpa [#allocation9 + $0x1], 0 }
  0x11   :  { %21 = vsyncpa [#allocation11], 0 }
  0x12   :  { %23 = vsyncpa [#allocation11 + $0x1], 0  ;;  %s1678_s26 = smov 0   ;;  %s1680_s0 = smov 0  }
  0x13   :  { %s1682_s27 = smov 0   ;;  %s1684_s28 = smov 0  }
  0x14   :  { %s1686_s29 = smov 0   ;;  %s1688_s30 = smov 0  }
  0x15 LB: > { %s1151_s7 = sadd.s32 4294967295, %s1630_s30   ;;  %s1152_s8 = sadd.s32 4294967294, %s1630_s30   ;;  %s1630_s30 = sphi %s1688_s30, %s29_s30   ;;  %s1626_s29 = sphi %s1686_s29, %s2018_s29   ;;  %s1622_s28 = sphi %s1684_s28, %s2017_s28   ;;  %s1618_s27 = sphi %s1682_s27, %s2016_s27   ;;  %s1614_s0 = sphi %s1680_s0, %s2015_s0   ;;  %s1610_s26 = sphi %s1678_s26, %s2014_s26  }
  0x16   : > { %s48_s9 = sadd.s32 1, %s1626_s29  ;;  %s165_s10 = sadd.s32 1, %s1618_s27 }
  0x17   : > { %p50_p5 = scmp.ge.s32.totalorder %s48_s9, 2  ;;  %p175_p6 = scmp.ne.s32.totalorder %s1618_s27, %s1614_s0 }
  0x18   : > { %p176_p7 = scmp.eq.s32.totalorder %s1151_s7, 1  ;;  %p181_p8 = scmp.ne.s32.totalorder %s1614_s0, %s1610_s26 }
  0x19   : > { %s2020_s9 = smov (%p50_p5, %s48_s9), 0  ;;  %p182_p10 = scmp.eq.s32.totalorder %s1152_s8, 1 }
  0x1a   : > { %p1718_p9 = por %p176_p7, %p175_p6  ;;  %s160_s12 = ssub.s32 %s1626_s29, %s2020_s9 }
  0x1b   : > { %p1157_p11 = scmp.ge.s32.totalorder %s1630_s30, 1  ;;  %p163_p12 = scmp.eq.s32.totalorder %s160_s12, 0 }
  0x1c   : > { %p1725_p13 = por %p182_p10, %p181_p8  ;;  %p266_p0 = scmp.lt.s32.totalorder %s1630_s30, 3 }
  0x1d   : > { %s1731_s14 = scalar_select %p163_p12, %s1618_s27, %s165_s10  }
  0x1e   : > { %p267_p1 = pnand %p1157_p11, %p266_p0 }
  0x1f   : > { %v371_v0 = vld [vmem:[%s2008_s3] sm:$0xff] (!%p267_p1)  ;;  %v372_v1 = vld [vmem:[%s2008_s3 + $0x8] sm:$0xff] (!%p267_p1)  ;;  %v373_v2 = vld [vmem:[%s2008_s3 + $0x10] sm:$0xff] (!%p267_p1)  ;;  %p320_p2 = scmp.lt.s32.totalorder (!%p267_p1), %s1622_s28, 1  ;;  %vm353_vm0 = vcmask (!%p267_p1), 261120   ;;  %vm350_vm1 = vcmask (!%p267_p1), 7168  }
  0x20   : > { %270 = sbr.rel (%p267_p1) target bundleno = 1235 (0x4d3), region = 36  ;;  %v1358_v3 = vpack.c.bf16 (!%p267_p1), %v372_v1, %v371_v0  ;;  %v374_v4 = vld [vmem:[%s2008_s3 + $0x18] sm:$0xff] (!%p267_p1)  ;;  %v592_v30 = vld [vmem:[%s2009_s4] sm:$0xff] (!%p267_p1)  ;;  %v593_v31 = vld [vmem:[%s2009_s4 + $0x8] sm:$0xff] (!%p267_p1)  ;;  %vm1637_vm4 = vmmov (!%p267_p1), 0   ;;  %s1920_s25 = sand.u32 (!%p267_p1), 1, %s1614_s0  }
  0x21   : > { %v1362_v5 = vpack.c.bf16 (!%p267_p1), %v374_v4, %v373_v2  ;;  %v1366_v32 = vpack.c.bf16 (!%p267_p1), %v593_v31, %v592_v30  ;;  %v594_v33 = vld [vmem:[%s2009_s4 + $0x10] sm:$0xff] (!%p267_p1)  ;;  %v595_v34 = vld [vmem:[%s2009_s4 + $0x18] sm:$0xff] (!%p267_p1)  ;;  %s1158_s7 = sshll.u32 (!%p267_p1), %s1920_s25, 3  ;;  %s964_s22 = scalar_lea.sflag (!%p267_p1), [#allocation9], %s1920_s25 }
  0x22   : > { %1359 = vmatprep.subr.bf16.mxu0 (!%p267_p1), %v1358_v3  ;;  %v1370_v35 = vpack.c.bf16 (!%p267_p1), %v595_v34, %v594_v33  ;;  %s311_s10 = scalar_lea.vmem (!%p267_p1), [#allocation8], %s1158_s7  ;;  %s318_s15 = scalar_lea.vmem (!%p267_p1), [#allocation10], %s1158_s7 }
  0x23   : > { %1361 = vmatpush3.bf16.msra.mxu0 (!%p267_p1), %v1358_v3  ;;  %1367 = vmatprep.subr.bf16.mxu1 (!%p267_p1), %v1366_v32  ;;  %s983_s12 = sshll.u32 (!%p267_p1), %s311_s10, 4  ;;  %s997_s16 = sshll.u32 (!%p267_p1), %s318_s15, 4  ;;  %s1929_s12 = int_to_ptr.vmem [resolvable:$true] %s983_s12  ;;  %s1936_s16 = int_to_ptr.vmem [resolvable:$true] %s997_s16 }
  0x24   : > { %1363 = vmatprep.subr.bf16.mxu0 (!%p267_p1), %v1362_v5  ;;  %1369 = vmatpush3.bf16.msra.mxu1 (!%p267_p1), %v1366_v32 }
  0x25   : > { %1371 = vmatprep.subr.bf16.mxu1 (!%p267_p1), %v1370_v35 }
  0x27   : > { %s1747_s23 = scalar_select %p320_p2, %s1622_s28, 1  ;;  %1365 = vmatpush3.bf16.msra.mxu0 %v1362_v5 }
  0x28   : > { %1373 = vmatpush3.bf16.msra.mxu1 %v1370_v35 }
  0x29   : > { %s1201_s24 = sshll.u32 %s1747_s23, 7 }
  0x2a   : > { %s327_s8 = scalar_lea.vmem %s2006_s1, %s1201_s24  ;;  %s334_s24 = scalar_lea.vmem %s2007_s2, %s1747_s23 }
  0x2b   : > { %v1753_v6 = vld [vmem:[%s327_s8] sm:$0xff]  ;;  %v1755_v7 = vld [vmem:[%s327_s8 + $0x8] sm:$0xff]  ;;  %v1757_v8 = vld [vmem:[%s327_s8 + $0x10] sm:$0xff]  ;;  %s345_s23 = sld [smem:[#allocation7 + %s1622_s28]] }
  0x2c   : > { %1267 = vmatprep.mubr.msk.f32.mxu0 %vm353_vm0, %v1753_v6  ;;  %v1375_v9 = vpack.c.bf16 %v1755_v7, %v1753_v6  ;;  %v1763_v10 = vld [vmem:[%s327_s8 + $0x18] sm:$0xff]  ;;  %v1765_v11 = vld [vmem:[%s327_s8 + $0x20] sm:$0xff]  ;;  %v1767_v12 = vld [vmem:[%s327_s8 + $0x28] sm:$0xff] }
  0x2d   : > { %v1378_v13 = vpack.c.bf16 %v1763_v10, %v1757_v8  ;;  %v1381_v14 = vpack.c.bf16 %v1767_v12, %v1765_v11  ;;  %v1773_v15 = vld [vmem:[%s327_s8 + $0x30] sm:$0xff]  ;;  %v1775_v16 = vld [vmem:[%s327_s8 + $0x38] sm:$0xff]  ;;  %v1777_v17 = vld [vmem:[%s327_s8 + $0x40] sm:$0xff]  ;;  %1268 = vmatmul.mubr.msk.f32.vlgmr.msra.gmra.mrb[0].mxu0 %vm353_vm0, %v1755_v7 }
  0x2e   : > { %v1384_v18 = vpack.c.bf16 %v1775_v16, %v1773_v15  ;;  %v1781_v19 = vld [vmem:[%s327_s8 + $0x48] sm:$0xff]  ;;  %v1783_v20 = vld [vmem:[%s327_s8 + $0x50] sm:$0xff]  ;;  %v1785_v21 = vld [vmem:[%s327_s8 + $0x58] sm:$0xff]  ;;  %1270 = vmatprep.mubr.msk.f32.mxu0 %vm353_vm0, %v1757_v8 }
  0x2f   : > { %v1387_v22 = vpack.c.bf16 %v1781_v19, %v1777_v17  ;;  %v1390_v23 = vpack.c.bf16 %v1785_v21, %v1783_v20  ;;  %v1791_v24 = vld [vmem:[%s327_s8 + $0x60] sm:$0xff]  ;;  %v1793_v25 = vld [vmem:[%s327_s8 + $0x68] sm:$0xff]  ;;  %v1799_v27 = vld [vmem:[%s327_s8 + $0x70] sm:$0xff] }
  0x30   : > { %v1393_v26 = vpack.c.bf16 %v1793_v25, %v1791_v24  ;;  %v1801_v28 = vld [vmem:[%s327_s8 + $0x78] sm:$0xff]  ;;  %v1849_v36 = vld [vmem:[%s334_s24] ss:$0 sm:$0xff]  ;;  %s1197_s8 = sshll.u32 %s1622_s28, 7  ;;  %s1518_s24 = scalar_lea.vmem %s1929_s12, 128 }
  0x31   : > { %v1396_v29 = vpack.c.bf16 %v1801_v28, %v1799_v27  ;;  %1271 = vmatmul.mubr.msk.f32.gmra.mrb[2].mxu0 %vm353_vm0, %v1763_v10  ;;  %s1927_s19 = scalar_lea.hbm %s2010_s5, %s1197_s8  ;;  %s1934_s21 = scalar_lea.hbm %s2011_s6, %s1197_s8 }
  0x32   : > { %1273 = vmatprep.mubr.msk.f32.mxu0 %vm353_vm0, %v1765_v11  ;;  %p1519_p3 = scmp.ne.s32.totalorder %s1929_s12, %s1518_s24 }
  0x34   : > { %p1520_p4 = pnand %p1519_p3, %p1718_p9 }
  0x35   : > { %1274 = vmatmul.mubr.msk.f32.gmra.mrb[4].mxu0 %vm353_vm0, %v1767_v12 }
  0x36   : > { %1276 = vmatprep.mubr.msk.f32.mxu0 %vm353_vm0, %v1773_v15  ;;  %p1521_p5 = pneg %p1520_p4 }
  0x39   : > { %1277 = vmatmul.mubr.msk.f32.gmra.mrb[6].mxu0 %vm353_vm0, %v1775_v16 }
  0x3a   : > { %1279 = vmatprep.mubr.msk.f32.mxu0 %vm353_vm0, %v1777_v17 }
  0x3d   : > { %1280 = vmatmul.mubr.msk.f32.gmra.mrb[8].mxu0 %vm353_vm0, %v1781_v19 }
  0x3e   : > { %1282 = vmatprep.mubr.msk.f32.mxu0 %vm353_vm0, %v1783_v20 }
  0x41   : > { %1283 = vmatmul.mubr.msk.f32.gmra.mrb[10].mxu0 %vm353_vm0, %v1785_v21 }
  0x42   : > { %1285 = vmatprep.mubr.msk.f32.mxu0 %vm353_vm0, %v1791_v24 }
  0x45   : > { %1286 = vmatmul.mubr.msk.f32.gmra.mrb[12].mxu0 %vm353_vm0, %v1793_v25 }
  0x46   : > { %1288 = vmatprep.mubr.msk.f32.mxu0 %vm353_vm0, %v1799_v27 }
  0x49   : > { %1289 = vmatmul.mubr.msk.f32.gmra.mrb[14].mxu0 %vm353_vm0, %v1801_v28 }
 0x100   : > { %v1269_v37 = vpop.f32.mrb[0].mxu0 }
 0x101   : > { %v503_v38 = vadd.f32 %v1269_v37, %v1849_v36  ;;  %v497_v39 = vpop.f32.mrb[1].mxu0 }
 0x102   : > { %v498_v40 = vadd.f32 %v1849_v36, %v497_v39 }
 0x104   : > { %1466 = vtanh.f32 %v498_v40  ;;  %v1272_v41 = vpop.f32.mrb[2].mxu0 }
 0x105   : > { %1468 = vtanh.f32 %v503_v38  ;;  %v513_v42 = vadd.f32 %v1272_v41, %v1849_v36  ;;  %v507_v43 = vpop.f32.mrb[3].mxu0 }
 0x106   : > { %v508_v44 = vadd.f32 %v1849_v36, %v507_v43 }
 0x107   : > { %1470 = vtanh.f32 %v513_v42 }
 0x108   : > { %1472 = vtanh.f32 %v508_v44  ;;  %v1275_v45 = vpop.f32.mrb[4].mxu0 }
 0x109   : > { %v523_v46 = vadd.f32 %v1275_v45, %v1849_v36  ;;  %v517_v47 = vpop.f32.mrb[5].mxu0 }
 0x10a   : > { %v518_v48 = vadd.f32 %v1849_v36, %v517_v47 }
 0x10b   : > { %1474 = vtanh.f32 %v523_v46 }
 0x10c   : > { %1476 = vtanh.f32 %v518_v48  ;;  %v1278_v49 = vpop.f32.mrb[6].mxu0 }
 0x10d   : > { %v533_v50 = vadd.f32 %v1278_v49, %v1849_v36  ;;  %v527_v51 = vpop.f32.mrb[7].mxu0 }
 0x10e   : > { %v1467_v52 = vpop.eup %1466  ;;  %v528_v53 = vadd.f32 %v1849_v36, %v527_v51 }
 0x10f   : > { %v1469_v54 = vpop.eup %1468  ;;  %1299 = vmatprep.mubr.msk.f32.mxu1 %vm353_vm0, %v1467_v52  ;;  %1478 = vtanh.f32 %v533_v50  ;;  %v1633_v50 = vmov -inf  }
 0x110   : > { %1300 = vmatmul.mubr.msk.f32.vlgmr.msra.gmra.mrb[0].mxu1 %vm353_vm0, %v1469_v54  ;;  %1480 = vtanh.f32 %v528_v53  ;;  %v1281_v55 = vpop.f32.mrb[8].mxu0  ;;  %351 = vst.msk [vmem:[#allocation3] sm:$0xff] %vm350_vm1, %v1633_v50 }
 0x111   : > { %v1471_v56 = vpop.eup %1470  ;;  %v543_v57 = vadd.f32 %v1281_v55, %v1849_v36  ;;  %v537_v58 = vpop.f32.mrb[9].mxu0 }
 0x112   : > { %v1473_v59 = vpop.eup %1472  ;;  %v538_v60 = vadd.f32 %v1849_v36, %v537_v58 }
 0x113   : > { %1302 = vmatprep.mubr.msk.f32.mxu1 %vm353_vm0, %v1473_v59  ;;  %1482 = vtanh.f32 %v543_v57 }
 0x114   : > { %1303 = vmatmul.mubr.msk.f32.gmra.mrb[2].mxu1 %vm353_vm0, %v1471_v56  ;;  %1484 = vtanh.f32 %v538_v60  ;;  %v1284_v61 = vpop.f32.mrb[10].mxu0 }
 0x115   : > { %v1475_v62 = vpop.eup %1474  ;;  %v553_v63 = vadd.f32 %v1284_v61, %v1849_v36  ;;  %v547_v0 = vpop.f32.mrb[11].mxu0 }
 0x116   : > { %v1477_v1 = vpop.eup %1476  ;;  %v548_v2 = vadd.f32 %v1849_v36, %v547_v0  ;;  %v829_v0 = vstv %s345_s23  ;;  %s1638_s23 = smov [#allocation8]  }
 0x117   : > { %1305 = vmatprep.mubr.msk.f32.mxu1 %vm353_vm0, %v1477_v1  ;;  %1486 = vtanh.f32 %v553_v63  ;;  %v835_v6 = vld [vmem:[#allocation3] sm:$0xff]  ;;  %s1522_s7 = sshll.u32 %s1638_s23, 4  ;;  %s1523_s7 = int_to_ptr.vmem [resolvable:$false] %s1522_s7 }
 0x118   : > { %1306 = vmatmul.mubr.msk.f32.gmra.mrb[4].mxu1 %vm353_vm0, %v1475_v62  ;;  %1488 = vtanh.f32 %v548_v2  ;;  %v1287_v3 = vpop.f32.mrb[12].mxu0  ;;  %v822_v62 = vlaneseq  ;;  %s1524_s17 = scalar_lea.vmem %s1523_s7, 256  ;;  %p1525_p6 = scmp.lt.s32.totalorder %s1929_s12, %s1523_s7 }
 0x119   : > { %v1479_v4 = vpop.eup %1478  ;;  %v563_v5 = vadd.f32 %v1287_v3, %v1849_v36  ;;  %v557_v30 = vpop.f32.mrb[13].mxu0  ;;  %p1526_p7 = scmp.lt.s32.totalorder %s1524_s17, %s1518_s24 }
 0x11a   : > { %v1481_v31 = vpop.eup %1480  ;;  %v558_v32 = vadd.f32 %v1849_v36, %v557_v30  ;;  %v823_v63 = vand.u32 127, %v822_v62  ;;  %v1635_v30 = vmov 0.0  }
 0x11b   : > { %1308 = vmatprep.mubr.msk.f32.mxu1 %vm353_vm0, %v1481_v31  ;;  %1490 = vtanh.f32 %v563_v5  ;;  %v1634_v5 = vmov 0   ;;  %352 = vst.msk [vmem:[#allocation4] sm:$0xff] %vm350_vm1, %v1635_v30  ;;  %v1636_v31 = vmov 0.0|0.0   ;;  %1355 = vmatprep.mubr.msk.f32.mxu0 %vm1637_vm4, %v1635_v30  ;;  %p1527_p8 = por %p1526_p7, %p1525_p6 }
 0x11c   : > { %1309 = vmatmul.mubr.msk.f32.gmra.mrb[6].mxu1 %vm353_vm0, %v1479_v4  ;;  %1492 = vtanh.f32 %v558_v32  ;;  %v1290_v33 = vpop.f32.mrb[14].mxu0  ;;  %vm826_vm2 = vcmp.lt.s32.totalorder %v823_v63, 8  ;;  %vm830_vm3 = vcmp.lt.s32.totalorder %v823_v63, %v829_v0  ;;  %1464 = vset.pattern.permute.xlu1 %v1634_v5  ;;  %354 = vst.msk [vmem:[#allocation5] sm:$0xff] %vm353_vm0, %v1635_v30 }
 0x11d   : > { %v1483_v34 = vpop.eup %1482  ;;  %v573_v35 = vadd.f32 %v1290_v33, %v1849_v36  ;;  %v567_v37 = vpop.f32.mrb[15].mxu0  ;;  %1374 = vmatprep.subr.bf16.mxu0 %v1636_v31  ;;  %p1528_p10 = pnand %p1527_p8, %p1521_p5 }
 0x11e   : > { %v1485_v38 = vpop.eup %1484  ;;  %v568_v39 = vadd.f32 %v1849_v36, %v567_v37  ;;  %1376 = vmatpush3.bf16.msra.mxu0 %v1375_v9 }
 0x11f   : > { %1311 = vmatprep.mubr.msk.f32.mxu1 %vm353_vm0, %v1485_v38  ;;  %1494 = vtanh.f32 %v573_v35  ;;  %1377 = vmatprep.subr.bf16.mxu0 %v1636_v31 }
 0x120   : > { %1312 = vmatmul.mubr.msk.f32.gmra.mrb[8].mxu1 %vm353_vm0, %v1483_v34  ;;  %1496 = vtanh.f32 %v568_v39 }
 0x121   : > { %v1487_v40 = vpop.eup %1486 }
 0x122   : > { %v1489_v41 = vpop.eup %1488  ;;  %1379 = vmatpush3.bf16.msra.mxu0 %v1378_v13  ;;  %v850_v17 = vld [vmem:[#allocation4] sm:$0xff] }
 0x123   : > { %1314 = vmatprep.mubr.msk.f32.mxu1 %vm353_vm0, %v1489_v41  ;;  %1380 = vmatprep.subr.bf16.mxu0 %v1636_v31 }
 0x124   : > { %1315 = vmatmul.mubr.msk.f32.gmra.mrb[10].mxu1 %vm353_vm0, %v1487_v40 }
 0x125   : > { %v1491_v42 = vpop.eup %1490 }
 0x126   : > { %v1493_v43 = vpop.eup %1492  ;;  %1382 = vmatpush3.bf16.msra.mxu0 %v1381_v14 }
 0x127   : > { %1317 = vmatprep.mubr.msk.f32.mxu1 %vm353_vm0, %v1493_v43  ;;  %1383 = vmatprep.subr.bf16.mxu0 %v1636_v31 }
 0x128   : > { %1318 = vmatmul.mubr.msk.f32.gmra.mrb[12].mxu1 %vm353_vm0, %v1491_v42 }
 0x129   : > { %v1495_v44 = vpop.eup %1494 }
 0x12a   : > { %v1497_v36 = vpop.eup %1496  ;;  %1385 = vmatpush3.bf16.msra.mxu0 %v1384_v18 }
 0x12b   : > { %1320 = vmatprep.mubr.msk.f32.mxu1 %vm353_vm0, %v1497_v36  ;;  %1386 = vmatprep.subr.bf16.mxu0 %v1636_v31 }
 0x12c   : > { %1321 = vmatmul.mubr.msk.f32.gmra.mrb[14].mxu1 %vm353_vm0, %v1495_v44 }
 0x12e   : > { %1388 = vmatpush3.bf16.msra.mxu0 %v1387_v22 }
 0x12f   : > { %1389 = vmatprep.subr.bf16.mxu0 %v1636_v31 }
 0x132   : > { %1391 = vmatpush3.bf16.msra.mxu0 %v1390_v23  ;;  %v857_v23 = vld [vmem:[#allocation5] sm:$0xff] }
 0x133   : > { %1392 = vmatprep.subr.bf16.mxu0 %v1636_v31 }
 0x136   : > { %1394 = vmatpush3.bf16.msra.mxu0 %v1393_v26 }
 0x137   : > { %1395 = vmatprep.subr.bf16.mxu0 %v1636_v31 }
 0x13a   : > { %1397 = vmatpush3.bf16.msra.mxu0 %v1396_v29 }
 0x1e3   : > { %v1301_v45 = vpop.f32.mrb[0].mxu1 }
 0x1e4   : > { %v710_v46 = vpop.f32.mrb[1].mxu1 }
 0x1e5   : > { %789 = vxpose.xlu0.b32.start [1/16] (narrow) %v710_v46, 8 }
 0x1e7   : > { %v1304_v47 = vpop.f32.mrb[2].mxu1 }
 0x1e8   : > { %v720_v48 = vpop.f32.mrb[3].mxu1 }
 0x1e9   : > { %790 = vxpose.xlu0.b32.cont [2/16] (narrow) %v1301_v45, 8 }
 0x1eb   : > { %v1307_v49 = vpop.f32.mrb[4].mxu1 }
 0x1ec   : > { %v730_v51 = vpop.f32.mrb[5].mxu1 }
 0x1ed   : > { %791 = vxpose.xlu0.b32.cont [3/16] (narrow) %v720_v48, 8 }
 0x1ef   : > { %v1310_v52 = vpop.f32.mrb[6].mxu1 }
 0x1f0   : > { %v740_v53 = vpop.f32.mrb[7].mxu1 }
 0x1f1   : > { %792 = vxpose.xlu0.b32.cont [4/16] (narrow) %v1304_v47, 8 }
 0x1f3   : > { %v1313_v54 = vpop.f32.mrb[8].mxu1 }
 0x1f4   : > { %v750_v55 = vpop.f32.mrb[9].mxu1 }
 0x1f5   : > { %793 = vxpose.xlu0.b32.cont [5/16] (narrow) %v730_v51, 8 }
 0x1f7   : > { %v1316_v56 = vpop.f32.mrb[10].mxu1 }
 0x1f8   : > { %v760_v57 = vpop.f32.mrb[11].mxu1 }
 0x1f9   : > { %794 = vxpose.xlu0.b32.cont [6/16] (narrow) %v1307_v49, 8 }
 0x1fb   : > { %v1319_v58 = vpop.f32.mrb[12].mxu1 }
 0x1fc   : > { %v770_v59 = vpop.f32.mrb[13].mxu1 }
 0x1fd   : > { %795 = vxpose.xlu0.b32.cont [7/16] (narrow) %v740_v53, 8 }
 0x1ff   : > { %v1322_v60 = vpop.f32.mrb[14].mxu1 }
 0x200   : > { %v780_v61 = vpop.f32.mrb[15].mxu1 }
 0x201   : > { %796 = vxpose.xlu0.b32.cont [8/16] (narrow) %v1310_v52, 8 }
 0x205   : > { %797 = vxpose.xlu0.b32.cont [9/16] (narrow) %v750_v55, 8 }
 0x209   : > { %798 = vxpose.xlu0.b32.cont [10/16] (narrow) %v1313_v54, 8 }
 0x20d   : > { %799 = vxpose.xlu0.b32.cont [11/16] (narrow) %v760_v57, 8 }
 0x211   : > { %800 = vxpose.xlu0.b32.cont [12/16] (narrow) %v1316_v56, 8 }
 0x215   : > { %801 = vxpose.xlu0.b32.cont [13/16] (narrow) %v770_v59, 8 }
 0x219   : > { %802 = vxpose.xlu0.b32.cont [14/16] (narrow) %v1319_v58, 8 }
 0x21d   : > { %803 = vxpose.xlu0.b32.cont [15/16] (narrow) %v780_v61, 8 }
 0x221   : > { %804 = vxpose.xlu0.b32.end [16/16] (narrow) %v1322_v60, 8 }
 0x24a   : > { %1465 = vset.pattern.permute.xlu0 %v1634_v5 }
 0x265   : > { %v805_v1 = vpop.trf.xlu0 }
 0x266   : > { %v827_v2 = vmul.f32 -1024.0, %v805_v1 }
 0x268   : > { %v828_v3 = vsel %vm826_vm2, %v827_v2, -1e+30 }
 0x269   : > { %v1885_v4 = vsel %vm830_vm3, %v805_v1, %v828_v3 }
 0x26a   : > { %836 = vmax.xlane.f32.xlu1 %v1885_v4 }
 0x2f7   : > { %v837_v7 = vpop.xlane.xlu1 %836 }
 0x2f8   : > { %v838_v8 = vmax.f32 %v835_v6, %v837_v7 }
 0x2fa   : > { %v839_v9 = vsub.f32 %v835_v6, %v838_v8  ;;  %936 = vst.msk [vmem:[#allocation3] sm:$0xff] %vm350_vm1, %v838_v8  ;;  %844 = vperm.xlu1 %1464, %v838_v8  }
 0x2fc   : > { %v840_v10 = vmul.f32 1.442695, %v839_v9 }
 0x2fe   : > { %1498 = vpow2.f32 %v840_v10 }
 0x301   : > { %v951_v16 = vld [vmem:[#allocation3] sm:$0xff] }
 0x308   : > { %v1499_v11 = vpop.eup %1498 }
 0x309   : > { %860 = vperm.xlu0 %1465, %v1499_v11   ;;  %v851_v18 = vmul.f32 %v1499_v11, %v850_v17 }
 0x379   : > { %v845_v12 = vpop.permute.xlu1 %844 }
 0x37a   : > { %v847_v13 = vsub.f32 %v1885_v4, %v845_v12 }
 0x37c   : > { %v848_v14 = vmul.f32 1.442695, %v847_v13 }
 0x37e   : > { %1500 = vpow2.f32 %v848_v14 }
 0x388   : > { %v1501_v15 = vpop.eup %1500  ;;  %v861_v24 = vpop.permute.xlu0 %860 }
 0x389   : > { %852 = vadd.xlane.f32.xlu1 %v1501_v15  ;;  %1356 = vmatmul.mubr.f32.vlgmr.msra.gmra.mrb[16].mxu0 %v1501_v15  ;;  %v863_v25 = vmul.f32 %v861_v24, %v857_v23 }
 0x39a   : > { %955 = vperm.xlu1 %1464, %v951_v16  }
 0x416   : > { %v853_v19 = vpop.xlane.xlu1 %852 }
 0x417   : > { %v854_v20 = vadd.f32 %v853_v19, %v851_v18 }
 0x419   : > { %856 = vst.msk [vmem:[#allocation4] sm:$0xff] %vm350_vm1, %v854_v20 }
 0x41a   : > { %v956_v29 = vpop.permute.xlu1 %955 }
 0x41b   : > { %v958_v32 = vsub.f32 %v1885_v4, %v956_v29 }
 0x41d   : > { %v959_v33 = vmul.f32 1.442695, %v958_v32 }
 0x420   : > { %v940_v21 = vld [vmem:[#allocation4] sm:$0xff] }
 0x421   : > { %1502 = vrcp.f32 %v940_v21 }
 0x422   : > { %1504 = vpow2.f32 %v959_v33 }
 0x42b   : > { %v1503_v22 = vpop.eup %1502 }
 0x42c   : > { %946 = vperm.xlu1 %1464, %v1503_v22   ;;  %v1505_v34 = vpop.eup %1504 }
 0x45c   : > { %v930_v26 = vpop.f32.mrb[16].mxu0 }
 0x45d   : > { %v934_v27 = vadd.f32 %v930_v26, %v863_v25  ;;  %v1357_v28 = vpop.f32.mrb[17].mxu0 }
 0x45f   : > { %935 = vst.msk [vmem:[#allocation5] sm:$0xff] %vm353_vm0, %v934_v27 }
 0x466   : > { %v943_v35 = vld [vmem:[#allocation5] sm:$0xff] }
 0x4ab   : > { %v947_v37 = vpop.permute.xlu1 %946 }
 0x4ac   : > { %v949_v38 = vmul.f32 %v947_v37, %v943_v35  ;;  %v961_v39 = vmul.f32 %v1505_v34, %v947_v37 }
 0x4ae   : > { %962 = vst [vmem:[%s318_s15] sm:$0xff] %v961_v39  ;;  %950 = vst.msk [vmem:[%s311_s10] sm:$0xff] %vm353_vm0, %v949_v38 }
 0x4af   : > { %1531 = shalt.err (!%p1528_p10)
}
 0x4b0   : > { %s1532_s8 = scalar_lea.hbm %s1927_s19, 128  ;;  %s1536_s18 = scalar_lea.hbm %s2010_s5, 256 }
 0x4b1   : > { %p1533_p11 = scmp.ne.s32.totalorder %s1927_s19, %s1532_s8  ;;  %p1537_p1 = scmp.lt.u32.totalorder %s1927_s19, %s2010_s5 }
 0x4b2   : > { %p1538_p2 = scmp.lt.u32.totalorder %s1536_s18, %s1532_s8  ;;  %p1540_p4 = scmp.lt.u32.totalorder %s1532_s8, %s1927_s19 }
 0x4b3   : > { %p1534_p12 = pnand %p1533_p11, %p1718_p9 }
 0x4b4   : > { %p1539_p3 = por %p1538_p2, %p1537_p1 }
 0x4b5   : > { %p1535_p0 = pneg %p1534_p12 }
 0x4b6   : > { %p1541_p5 = por %p1540_p4, %p1539_p3 }
 0x4b8   : > { %p1542_p6 = pnand %p1541_p5, %p1535_p0 }
 0x4ba   : > { %1545 = shalt.err (!%p1542_p6)
}
 0x4bb   : > { %1398 = dma.vmem_to_hbm [thread:$0]  (%p1718_p9), %s1929_s12, 128, %s1927_s19, %s964_s22  }
 0x4bc   : > { %s969_s24 = scalar_lea.sflag [#allocation11], %s1920_s25  ;;  %s1546_s23 = scalar_lea.vmem %s1936_s16, 128 }
 0x4bd   : > { %p1547_p7 = scmp.ne.s32.totalorder %s1936_s16, %s1546_s23  ;;  %s1639_s7 = smov [#allocation10]  }
 0x4be   : > { %s1550_s17 = sshll.u32 %s1639_s7, 4  ;;  %s1551_s17 = int_to_ptr.vmem [resolvable:$false] %s1550_s17 }
 0x4bf   : > { %p1548_p8 = pnand %p1547_p7, %p1718_p9  ;;  %s1552_s8 = scalar_lea.vmem %s1551_s17, 256 }
 0x4c0   : > { %p1553_p11 = scmp.lt.s32.totalorder %s1936_s16, %s1551_s17  ;;  %p1554_p12 = scmp.lt.s32.totalorder %s1552_s8, %s1546_s23 }
 0x4c1   : > { %p1549_p10 = pneg %p1548_p8 }
 0x4c2   : > { %p1555_p0 = por %p1554_p12, %p1553_p11 }
 0x4c4   : > { %p1556_p1 = pnand %p1555_p0, %p1549_p10 }
 0x4c6   : > { %1559 = shalt.err (!%p1556_p1)
}
 0x4c7   : > { %s1560_s25 = scalar_lea.hbm %s1934_s21, 128  ;;  %s1564_s22 = scalar_lea.hbm %s2011_s6, 256 }
 0x4c8   : > { %p1561_p2 = scmp.ne.s32.totalorder %s1934_s21, %s1560_s25  ;;  %p1565_p5 = scmp.lt.u32.totalorder %s1934_s21, %s2011_s6 }
 0x4c9   : > { %p1566_p6 = scmp.lt.u32.totalorder %s1564_s22, %s1560_s25  ;;  %p1568_p8 = scmp.lt.u32.totalorder %s1560_s25, %s1934_s21 }
 0x4ca   : > { %p1562_p3 = pnand %p1561_p2, %p1718_p9 }
 0x4cb   : > { %p1567_p7 = por %p1566_p6, %p1565_p5 }
 0x4cc   : > { %p1563_p4 = pneg %p1562_p3 }
 0x4cd   : > { %p1569_p10 = por %p1568_p8, %p1567_p7 }
 0x4cf   : > { %p1570_p11 = pnand %p1569_p10, %p1563_p4 }
 0x4d1   : > { %1573 = shalt.err (!%p1570_p11)
}
 0x4d2   : > { %1399 = dma.vmem_to_hbm [thread:$0]  (%p1718_p9), %s1936_s16, 128, %s1934_s21, %s969_s24  }
 0x4d3 PF: > { %p1409_p12 = scmp.ge.s32.totalorder %s1630_s30, 2  ;;  %s1009_s18 = sand.u32 1, %s1610_s26  }
 0x4d4   : > { %s1010_s20 = scalar_lea.sflag [#allocation9], %s1009_s18 }
 0x4d5   : > { %p1403_p0 = pnand %p1409_p12, %p1725_p13 }
 0x4d7   : > { %1601 = dma.done.wait (!%p1403_p0), %s1010_s20, 128  }
 0x4d8   : > { %1603 = vsyncadd (!%p1403_p0), %s1010_s20, 4294967168  ;;  %s1019_s28 = scalar_lea.sflag [#allocation11], %s1009_s18 }
 0x4d9   : > { %1605 = dma.done.wait (!%p1403_p0), %s1019_s28, 128  }
 0x4da   : > { %1607 = vsyncadd (!%p1403_p0), %s1019_s28, 4294967168  ;;  %s29_s30 = sadd.s32 1, %s1630_s30   ;;  %s2014_s26 = smov %s1614_s0 }
 0x4db   : > { %p26_p1 = scmp.ge.s32.totalorder %s29_s30, 4   ;;  %s2015_s0 = smov %s1618_s27 }
 0x4dc   : > { %s2016_s27 = smov %s1731_s14  ;;  %s2017_s28 = smov %s1626_s29 }
 0x4dd   : > { %s2018_s29 = smov %s2020_s9  ;;  %28 = sbr.rel (!%p26_p1) target bundleno = 21 (0x15), region = 106 }
 0x4e4   :  { %1024 = vsyncpa [#allocation9], 1 }
 0x4e5   :  { %1026 = vsyncpa [#allocation9 + $0x1], 1 }
 0x4e6   :  { %1027 = vsyncpa [#allocation11], 1 }
 0x4e7   :  { %1029 = vsyncpa [#allocation11 + $0x1], 1 }

</bundles_post_ra>
